<compile_context>
chip_gen: v7x
topology: tpu7x:2x2x1
jax: 0.10.0
libtpu: 0.0.40
codegen_flags: <defaults>
</compile_context>

<pallas_src>
import functools

import jax
import jax.numpy as jnp
from jax import lax
from jax.experimental import pallas as pl
from jax.experimental.pallas import tpu as pltpu

LANES = 128
SUBLANES = 8
TILE_R = 1024          # rows per grid step (1024 x 128 x f32 = 512 KiB/block)
NUM_CORES = 2          # leading "parallel" grid axis (v7x has 2 TCs/chip)


def _round_up(x, m):
    return ((x + m - 1) // m) * m


def _combo_kernel(preds_ref, labels_ref, out_ref, acc_ref, *,
                  n_valid, tile_r, tiles_per_core, full_tiles, needs_mask,
                  beta, eps, from_logits):
    c = pl.program_id(0)
    j = pl.program_id(1)

    @pl.when(j == 0)
    def _init():
        acc_ref[...] = jnp.zeros_like(acc_ref)

    def accumulate(masked):
        x = preds_ref[...].astype(jnp.float32)
        y = labels_ref[...].astype(jnp.float32)
        if masked:
            # Mask out padded / out-of-bounds elements of this tile using the
            # global flat element index (n_valid is a compile-time constant).
            base = (c * tiles_per_core + j) * (tile_r * LANES)
            row = lax.broadcasted_iota(jnp.int32, (tile_r, LANES), 0)
            col = lax.broadcasted_iota(jnp.int32, (tile_r, LANES), 1)
            m = (base + row * LANES + col) < n_valid
            x = jnp.where(m, x, 0.0)
            y = jnp.where(m, y, 0.0)

        p = jax.nn.sigmoid(x) if from_logits else x   # logsigmoid(x).exp()
        log_p = jnp.log(p + eps)
        log_1mp = jnp.log((1.0 - p) + eps)
        bce = beta * (y * log_p) + (1.0 - beta) * ((1.0 - y) * log_1mp)
        if masked:
            bce = jnp.where(m, bce, 0.0)
            p = jnp.where(m, p, 0.0)

        def fold(q):   # (tile_r, 128) -> (8, 128): pure VALU adds
            return q.reshape(tile_r // SUBLANES, SUBLANES, LANES).sum(axis=0)

        acc_ref[0] += fold(bce)       # BCE elementwise-term sum
        acc_ref[1] += fold(p * y)     # dice intersection
        acc_ref[2] += fold(p)         # sum of probabilities
        acc_ref[3] += fold(y)         # sum of labels

    if not needs_mask:
        accumulate(False)
    elif full_tiles == 0:
        accumulate(True)
    else:
        logical = c * tiles_per_core + j

        @pl.when(logical < full_tiles)
        def _full():
            accumulate(False)

        @pl.when(logical >= full_tiles)
        def _tail():
            accumulate(True)

    @pl.when(j == pl.num_programs(1) - 1)
    def _finalize():
        out_ref[0] = acc_ref[...]     # per-core partial sums


def combo_loss(preds, labels, *, mode="binary", alpha=0.5, beta=0.5,
               eps=1e-7, from_logits=True, smooth=0.0):
    if mode != "binary":
        # TODO(synk): multiclass (softmax over C) / multilabel (per-channel
        # dice) modes of smp.losses.DiceLoss are not implemented.
        raise NotImplementedError("only binary mode is implemented")
    assert preds.shape == labels.shape
    n = preds.size

    rows = _round_up(pl.cdiv(n, LANES), SUBLANES)
    total = rows * LANES
    if total == n:
        # Common case: copy-free reshape to a lane-dense slab, native dtypes.
        p2 = preds.reshape(rows, LANES)
        l2 = labels.reshape(rows, LANES)
    else:
        # Rare remainder path: one small pad copy; padded elements are masked
        # out inside the kernel, so pad values never affect the result.
        pad = total - n
        p2 = jnp.pad(preds.reshape(-1), (0, pad)).reshape(rows, LANES)
        l2 = jnp.pad(labels.reshape(-1), (0, pad)).reshape(rows, LANES)

    tile_r = min(TILE_R, rows)                 # multiple of 8 in both branches
    num_blocks = pl.cdiv(rows, tile_r)
    tiles_per_core = pl.cdiv(num_blocks, NUM_CORES)
    chunk = tile_r * LANES
    full_tiles = n // chunk                    # tiles with no invalid elements
    needs_mask = NUM_CORES * tiles_per_core * chunk != n

    def in_map(c, j):
        # Clamp so redundant tiles (core imbalance) re-read the last block; the
        # in-kernel mask zeroes their contribution.
        return (jnp.minimum(c * tiles_per_core + j, num_blocks - 1), 0)

    kernel = functools.partial(
        _combo_kernel,
        n_valid=n, tile_r=tile_r, tiles_per_core=tiles_per_core,
        full_tiles=full_tiles, needs_mask=needs_mask,
        beta=beta, eps=eps, from_logits=from_logits)

    partials = pl.pallas_call(
        kernel,
        out_shape=jax.ShapeDtypeStruct((NUM_CORES, 4, SUBLANES, LANES),
                                       jnp.float32),
        grid_spec=pltpu.PrefetchScalarGridSpec(
            num_scalar_prefetch=0,
            grid=(NUM_CORES, tiles_per_core),
            in_specs=[
                pl.BlockSpec((tile_r, LANES), in_map),
                pl.BlockSpec((tile_r, LANES), in_map),
            ],
            out_specs=pl.BlockSpec((1, 4, SUBLANES, LANES),
                                   lambda c, j: (c, 0, 0, 0)),
            scratch_shapes=[pltpu.VMEM((4, SUBLANES, LANES), jnp.float32)],
        ),
        compiler_params=pltpu.CompilerParams(
            dimension_semantics=("parallel", "arbitrary")),
    )(p2, l2)

    sums = jnp.sum(partials, axis=(0, 2, 3))             # (4,) global sums
    bce_sum, inter, p_sum, y_sum = sums[0], sums[1], sums[2], sums[3]

    # ModifiedBCELoss: -mean(beta*y*log(p+eps) + (1-beta)*(1-y)*log(1-p+eps))
    bce = -bce_sum / n
    # smp.losses.DiceLoss (binary mode): global soft-dice, zero-masked when
    # the target has no positives.
    cardinality = p_sum + y_sum
    dice_score = (2.0 * inter + smooth) / jnp.maximum(cardinality + smooth, eps)
    dice_loss = (1.0 - dice_score) * (y_sum > 0).astype(jnp.float32)
    # ComboLoss: alpha * bce - (1 - alpha) * (-dice + 1)
    return alpha * bce - (1.0 - alpha) * (1.0 - dice_loss)


def _reference(preds, labels, *, alpha=0.5, beta=0.5, eps=1e-7,
               from_logits=True, smooth=0.0):
    p = preds.astype(jnp.float32)
    if from_logits:
        p = jax.nn.sigmoid(p)
    y = labels.astype(jnp.float32)
    bce_elem = (beta * (y * jnp.log(p + eps))
                + (1.0 - beta) * ((1.0 - y) * jnp.log(1.0 - p + eps)))
    bce = -jnp.mean(bce_elem)
    inter = jnp.sum(p * y)
    card = jnp.sum(p + y)
    dice_score = (2.0 * inter + smooth) / jnp.maximum(card + smooth, eps)
    dice_loss = (1.0 - dice_score) * (jnp.sum(y) > 0).astype(jnp.float32)
    return alpha * bce - (1.0 - alpha) * (1.0 - dice_loss)


if __name__ == "__main__":
    key = jax.random.PRNGKey(0)
    k1, k2 = jax.random.split(key)
    # Segmentation-style shapes: (N, C, H, W), preds are logits.
    preds = jax.random.normal(k1, (2, 4, 16, 16), dtype=jnp.float32)
    labels = (jax.random.uniform(k2, (2, 4, 16, 16)) > 0.5).astype(jnp.float32)

    loss = combo_loss(preds, labels)
    loss = jax.block_until_ready(loss)

    ref = _reference(preds, labels)
    assert jnp.allclose(loss, ref, atol=1e-5, rtol=1e-5), (loss, ref)
    print("KERNEL_OK")
</pallas_src>

<mosaic_0001>
module attributes {stable_mosaic.version = 11 : i64} {
  func.func @_combo_kernel(%arg0: i32, %arg1: i32, %arg2: memref<16x128xf32, #tpu.memory_space<vmem>>, %arg3: memref<16x128xf32, #tpu.memory_space<vmem>>, %arg4: memref<1x4x8x128xf32, #tpu.memory_space<vmem>>, %arg5: memref<4x8x128xf32, #tpu.memory_space<vmem>>) attributes {dimension_semantics = [#tpu.dimension_semantics<parallel>, #tpu.dimension_semantics<arbitrary>], iteration_bounds = array<i64: 2, 1>, scalar_prefetch = 0 : i64, scratch_operands = 1 : i64, tpu.core_type = #tpu.core_type<tc>, window_params = [{transform_indices = @transform_0, window_bounds = array<i64: 16, 128>}, {transform_indices = @transform_1, window_bounds = array<i64: 16, 128>}, {transform_indices = @transform_2, window_bounds = array<i64: 1, 4, 8, 128>}]} {
    %c0_i32 = arith.constant 0 : i32
    %0 = arith.cmpi eq, %arg1, %c0_i32 : i32
    %1 = arith.extui %0 : i1 to i32
    %c0_i32_0 = arith.constant 0 : i32
    %2 = arith.cmpi ne, %1, %c0_i32_0 : i32
    scf.if %2 {
      %cst = arith.constant 0.000000e+00 : f32
      %14 = vector.broadcast %cst : f32 to vector<4x8x128xf32>
      %c0 = arith.constant 0 : index
      %c0_7 = arith.constant 0 : index
      %c0_8 = arith.constant 0 : index
      %15 = vector.load %arg5[%c0, %c0_7, %c0_8] : memref<4x8x128xf32, #tpu.memory_space<vmem>>, vector<4x8x128xf32>
      tpu.vector_store %arg5[%c0, %c0_7, %c0_8], %14 {strides = array<i32>} : memref<4x8x128xf32, #tpu.memory_space<vmem>>, vector<4x8x128xf32>,
    } else {
    }
    %c1_i32 = arith.constant 1 : i32
    %3 = arith.muli %arg0, %c1_i32 : i32
    %4 = arith.addi %3, %arg1 : i32
    %c1_i32_1 = arith.constant 1 : i32
    %5 = arith.cmpi slt, %4, %c1_i32_1 : i32
    %6 = arith.extui %5 : i1 to i32
    %c0_i32_2 = arith.constant 0 : i32
    %7 = arith.cmpi ne, %6, %c0_i32_2 : i32
    scf.if %7 {
      %c0 = arith.constant 0 : index
      %c0_7 = arith.constant 0 : index
      %14 = vector.load %arg2[%c0, %c0_7] : memref<16x128xf32, #tpu.memory_space<vmem>>, vector<16x128xf32>
      %c0_8 = arith.constant 0 : index
      %c0_9 = arith.constant 0 : index
      %15 = vector.load %arg3[%c0_8, %c0_9] : memref<16x128xf32, #tpu.memory_space<vmem>>, vector<16x128xf32>
      %16 = arith.negf %14 : vector<16x128xf32>
      %17 = math.exp %16 : vector<16x128xf32>
      %cst = arith.constant 1.000000e+00 : f32
      %18 = vector.broadcast %cst : f32 to vector<16x128xf32>
      %19 = arith.addf %18, %17 : vector<16x128xf32>
      %20 = arith.divf %18, %19 : vector<16x128xf32>
      %cst_10 = arith.constant 1.000000e-07 : f32
      %21 = vector.broadcast %cst_10 : f32 to vector<16x128xf32>
      %22 = arith.addf %20, %21 : vector<16x128xf32>
      %23 = math.log %22 : vector<16x128xf32>
      %cst_11 = arith.constant 1.000000e+00 : f32
      %24 = vector.broadcast %cst_11 : f32 to vector<16x128xf32>
      %25 = arith.subf %24, %20 : vector<16x128xf32>
      %cst_12 = arith.constant 1.000000e-07 : f32
      %26 = vector.broadcast %cst_12 : f32 to vector<16x128xf32>
      %27 = arith.addf %25, %26 : vector<16x128xf32>
      %28 = math.log %27 : vector<16x128xf32>
      %29 = arith.mulf %15, %23 : vector<16x128xf32>
      %cst_13 = arith.constant 5.000000e-01 : f32
      %30 = vector.broadcast %cst_13 : f32 to vector<16x128xf32>
      %31 = arith.mulf %30, %29 : vector<16x128xf32>
      %cst_14 = arith.constant 1.000000e+00 : f32
      %32 = vector.broadcast %cst_14 : f32 to vector<16x128xf32>
      %33 = arith.subf %32, %15 : vector<16x128xf32>
      %34 = arith.mulf %33, %28 : vector<16x128xf32>
      %cst_15 = arith.constant 5.000000e-01 : f32
      %35 = vector.broadcast %cst_15 : f32 to vector<16x128xf32>
      %36 = arith.mulf %35, %34 : vector<16x128xf32>
      %37 = arith.addf %31, %36 : vector<16x128xf32>
      %c0_16 = arith.constant 0 : index
      %c0_17 = arith.constant 0 : index
      %c0_18 = arith.constant 0 : index
      %38 = vector.load %arg5[%c0_16, %c0_17, %c0_18] : memref<4x8x128xf32, #tpu.memory_space<vmem>>, vector<1x8x128xf32>
      %39 = vector.shape_cast %38 : vector<1x8x128xf32> to vector<8x128xf32>
      %40 = vector.shape_cast %37 : vector<16x128xf32> to vector<2x8x128xf32>
      %cst_19 = arith.constant dense<0.000000e+00> : vector<8x128xf32>
      %41 = vector.multi_reduction <add>, %40, %cst_19 [0] : vector<2x8x128xf32> to vector<8x128xf32>
      %42 = arith.addf %39, %41 : vector<8x128xf32>
      %c0_20 = arith.constant 0 : index
      %c0_21 = arith.constant 0 : index
      %c0_22 = arith.constant 0 : index
      %43 = vector.load %arg5[%c0_20, %c0_21, %c0_22] : memref<4x8x128xf32, #tpu.memory_space<vmem>>, vector<1x8x128xf32>
      %44 = vector.shape_cast %43 : vector<1x8x128xf32> to vector<8x128xf32>
      %45 = vector.shape_cast %42 : vector<8x128xf32> to vector<1x8x128xf32>
      tpu.vector_store %arg5[%c0_20, %c0_21, %c0_22], %45 {strides = array<i32>} : memref<4x8x128xf32, #tpu.memory_space<vmem>>, vector<1x8x128xf32>,
      %c1 = arith.constant 1 : index
      %c0_23 = arith.constant 0 : index
      %c0_24 = arith.constant 0 : index
      %46 = vector.load %arg5[%c1, %c0_23, %c0_24] : memref<4x8x128xf32, #tpu.memory_space<vmem>>, vector<1x8x128xf32>
      %47 = vector.shape_cast %46 : vector<1x8x128xf32> to vector<8x128xf32>
      %48 = arith.mulf %20, %15 : vector<16x128xf32>
      %49 = vector.shape_cast %48 : vector<16x128xf32> to vector<2x8x128xf32>
      %cst_25 = arith.constant dense<0.000000e+00> : vector<8x128xf32>
      %50 = vector.multi_reduction <add>, %49, %cst_25 [0] : vector<2x8x128xf32> to vector<8x128xf32>
      %51 = arith.addf %47, %50 : vector<8x128xf32>
      %c1_26 = arith.constant 1 : index
      %c0_27 = arith.constant 0 : index
      %c0_28 = arith.constant 0 : index
      %52 = vector.load %arg5[%c1_26, %c0_27, %c0_28] : memref<4x8x128xf32, #tpu.memory_space<vmem>>, vector<1x8x128xf32>
      %53 = vector.shape_cast %52 : vector<1x8x128xf32> to vector<8x128xf32>
      %54 = vector.shape_cast %51 : vector<8x128xf32> to vector<1x8x128xf32>
      tpu.vector_store %arg5[%c1_26, %c0_27, %c0_28], %54 {strides = array<i32>} : memref<4x8x128xf32, #tpu.memory_space<vmem>>, vector<1x8x128xf32>,
      %c2 = arith.constant 2 : index
      %c0_29 = arith.constant 0 : index
      %c0_30 = arith.constant 0 : index
      %55 = vector.load %arg5[%c2, %c0_29, %c0_30] : memref<4x8x128xf32, #tpu.memory_space<vmem>>, vector<1x8x128xf32>
      %56 = vector.shape_cast %55 : vector<1x8x128xf32> to vector<8x128xf32>
      %57 = vector.shape_cast %20 : vector<16x128xf32> to vector<2x8x128xf32>
      %cst_31 = arith.constant dense<0.000000e+00> : vector<8x128xf32>
      %58 = vector.multi_reduction <add>, %57, %cst_31 [0] : vector<2x8x128xf32> to vector<8x128xf32>
      %59 = arith.addf %56, %58 : vector<8x128xf32>
      %c2_32 = arith.constant 2 : index
      %c0_33 = arith.constant 0 : index
      %c0_34 = arith.constant 0 : index
      %60 = vector.load %arg5[%c2_32, %c0_33, %c0_34] : memref<4x8x128xf32, #tpu.memory_space<vmem>>, vector<1x8x128xf32>
      %61 = vector.shape_cast %60 : vector<1x8x128xf32> to vector<8x128xf32>
      %62 = vector.shape_cast %59 : vector<8x128xf32> to vector<1x8x128xf32>
      tpu.vector_store %arg5[%c2_32, %c0_33, %c0_34], %62 {strides = array<i32>} : memref<4x8x128xf32, #tpu.memory_space<vmem>>, vector<1x8x128xf32>,
      %c3 = arith.constant 3 : index
      %c0_35 = arith.constant 0 : index
      %c0_36 = arith.constant 0 : index
      %63 = vector.load %arg5[%c3, %c0_35, %c0_36] : memref<4x8x128xf32, #tpu.memory_space<vmem>>, vector<1x8x128xf32>
      %64 = vector.shape_cast %63 : vector<1x8x128xf32> to vector<8x128xf32>
      %65 = vector.shape_cast %15 : vector<16x128xf32> to vector<2x8x128xf32>
      %cst_37 = arith.constant dense<0.000000e+00> : vector<8x128xf32>
      %66 = vector.multi_reduction <add>, %65, %cst_37 [0] : vector<2x8x128xf32> to vector<8x128xf32>
      %67 = arith.addf %64, %66 : vector<8x128xf32>
      %c3_38 = arith.constant 3 : index
      %c0_39 = arith.constant 0 : index
      %c0_40 = arith.constant 0 : index
      %68 = vector.load %arg5[%c3_38, %c0_39, %c0_40] : memref<4x8x128xf32, #tpu.memory_space<vmem>>, vector<1x8x128xf32>
      %69 = vector.shape_cast %68 : vector<1x8x128xf32> to vector<8x128xf32>
      %70 = vector.shape_cast %67 : vector<8x128xf32> to vector<1x8x128xf32>
      tpu.vector_store %arg5[%c3_38, %c0_39, %c0_40], %70 {strides = array<i32>} : memref<4x8x128xf32, #tpu.memory_space<vmem>>, vector<1x8x128xf32>,
    } else {
    }
    %c1_i32_3 = arith.constant 1 : i32
    %8 = arith.cmpi sge, %4, %c1_i32_3 : i32
    %9 = arith.extui %8 : i1 to i32
    %c0_i32_4 = arith.constant 0 : i32
    %10 = arith.cmpi ne, %9, %c0_i32_4 : i32
    scf.if %10 {
      %c0 = arith.constant 0 : index
      %c0_7 = arith.constant 0 : index
      %14 = vector.load %arg2[%c0, %c0_7] : memref<16x128xf32, #tpu.memory_space<vmem>>, vector<16x128xf32>
      %c0_8 = arith.constant 0 : index
      %c0_9 = arith.constant 0 : index
      %15 = vector.load %arg3[%c0_8, %c0_9] : memref<16x128xf32, #tpu.memory_space<vmem>>, vector<16x128xf32>
      %c1_i32_10 = arith.constant 1 : i32
      %16 = arith.muli %arg0, %c1_i32_10 : i32
      %17 = arith.addi %16, %arg1 : i32
      %c2048_i32 = arith.constant 2048 : i32
      %18 = arith.muli %17, %c2048_i32 : i32
      %19 = tpu.iota {dimensions = array<i32: 0>} : vector<16x128xi32>
      %20 = tpu.iota {dimensions = array<i32: 1>} : vector<16x128xi32>
      %c128_i32 = arith.constant 128 : i32
      %21 = vector.broadcast %c128_i32 : i32 to vector<16x128xi32>
      %22 = arith.muli %19, %21 : vector<16x128xi32>
      %23 = vector.broadcast %18 : i32 to vector<16x128xi32>
      %24 = arith.addi %23, %22 : vector<16x128xi32>
      %25 = arith.addi %24, %20 : vector<16x128xi32>
      %c2048_i32_11 = arith.constant 2048 : i32
      %26 = vector.broadcast %c2048_i32_11 : i32 to vector<16x128xi32>
      %27 = arith.cmpi slt, %25, %26 : vector<16x128xi32>
      %cst = arith.constant 0.000000e+00 : f32
      %28 = vector.broadcast %cst : f32 to vector<16x128xf32>
      %29 = arith.select %27, %14, %28 : vector<16x128xi1>, vector<16x128xf32>
      %cst_12 = arith.constant 0.000000e+00 : f32
      %30 = vector.broadcast %cst_12 : f32 to vector<16x128xf32>
      %31 = arith.select %27, %15, %30 : vector<16x128xi1>, vector<16x128xf32>
      %32 = arith.negf %29 : vector<16x128xf32>
      %33 = math.exp %32 : vector<16x128xf32>
      %cst_13 = arith.constant 1.000000e+00 : f32
      %34 = vector.broadcast %cst_13 : f32 to vector<16x128xf32>
      %35 = arith.addf %34, %33 : vector<16x128xf32>
      %36 = arith.divf %34, %35 : vector<16x128xf32>
      %cst_14 = arith.constant 1.000000e-07 : f32
      %37 = vector.broadcast %cst_14 : f32 to vector<16x128xf32>
      %38 = arith.addf %36, %37 : vector<16x128xf32>
      %39 = math.log %38 : vector<16x128xf32>
      %cst_15 = arith.constant 1.000000e+00 : f32
      %40 = vector.broadcast %cst_15 : f32 to vector<16x128xf32>
      %41 = arith.subf %40, %36 : vector<16x128xf32>
      %cst_16 = arith.constant 1.000000e-07 : f32
      %42 = vector.broadcast %cst_16 : f32 to vector<16x128xf32>
      %43 = arith.addf %41, %42 : vector<16x128xf32>
      %44 = math.log %43 : vector<16x128xf32>
      %45 = arith.mulf %31, %39 : vector<16x128xf32>
      %cst_17 = arith.constant 5.000000e-01 : f32
      %46 = vector.broadcast %cst_17 : f32 to vector<16x128xf32>
      %47 = arith.mulf %46, %45 : vector<16x128xf32>
      %cst_18 = arith.constant 1.000000e+00 : f32
      %48 = vector.broadcast %cst_18 : f32 to vector<16x128xf32>
      %49 = arith.subf %48, %31 : vector<16x128xf32>
      %50 = arith.mulf %49, %44 : vector<16x128xf32>
      %cst_19 = arith.constant 5.000000e-01 : f32
      %51 = vector.broadcast %cst_19 : f32 to vector<16x128xf32>
      %52 = arith.mulf %51, %50 : vector<16x128xf32>
      %53 = arith.addf %47, %52 : vector<16x128xf32>
      %cst_20 = arith.constant 0.000000e+00 : f32
      %54 = vector.broadcast %cst_20 : f32 to vector<16x128xf32>
      %55 = arith.select %27, %53, %54 : vector<16x128xi1>, vector<16x128xf32>
      %cst_21 = arith.constant 0.000000e+00 : f32
      %56 = vector.broadcast %cst_21 : f32 to vector<16x128xf32>
      %57 = arith.select %27, %36, %56 : vector<16x128xi1>, vector<16x128xf32>
      %c0_22 = arith.constant 0 : index
      %c0_23 = arith.constant 0 : index
      %c0_24 = arith.constant 0 : index
      %58 = vector.load %arg5[%c0_22, %c0_23, %c0_24] : memref<4x8x128xf32, #tpu.memory_space<vmem>>, vector<1x8x128xf32>
      %59 = vector.shape_cast %58 : vector<1x8x128xf32> to vector<8x128xf32>
      %60 = vector.shape_cast %55 : vector<16x128xf32> to vector<2x8x128xf32>
      %cst_25 = arith.constant dense<0.000000e+00> : vector<8x128xf32>
      %61 = vector.multi_reduction <add>, %60, %cst_25 [0] : vector<2x8x128xf32> to vector<8x128xf32>
      %62 = arith.addf %59, %61 : vector<8x128xf32>
      %c0_26 = arith.constant 0 : index
      %c0_27 = arith.constant 0 : index
      %c0_28 = arith.constant 0 : index
      %63 = vector.load %arg5[%c0_26, %c0_27, %c0_28] : memref<4x8x128xf32, #tpu.memory_space<vmem>>, vector<1x8x128xf32>
      %64 = vector.shape_cast %63 : vector<1x8x128xf32> to vector<8x128xf32>
      %65 = vector.shape_cast %62 : vector<8x128xf32> to vector<1x8x128xf32>
      tpu.vector_store %arg5[%c0_26, %c0_27, %c0_28], %65 {strides = array<i32>} : memref<4x8x128xf32, #tpu.memory_space<vmem>>, vector<1x8x128xf32>,
      %c1 = arith.constant 1 : index
      %c0_29 = arith.constant 0 : index
      %c0_30 = arith.constant 0 : index
      %66 = vector.load %arg5[%c1, %c0_29, %c0_30] : memref<4x8x128xf32, #tpu.memory_space<vmem>>, vector<1x8x128xf32>
      %67 = vector.shape_cast %66 : vector<1x8x128xf32> to vector<8x128xf32>
      %68 = arith.mulf %57, %31 : vector<16x128xf32>
      %69 = vector.shape_cast %68 : vector<16x128xf32> to vector<2x8x128xf32>
      %cst_31 = arith.constant dense<0.000000e+00> : vector<8x128xf32>
      %70 = vector.multi_reduction <add>, %69, %cst_31 [0] : vector<2x8x128xf32> to vector<8x128xf32>
      %71 = arith.addf %67, %70 : vector<8x128xf32>
      %c1_32 = arith.constant 1 : index
      %c0_33 = arith.constant 0 : index
      %c0_34 = arith.constant 0 : index
      %72 = vector.load %arg5[%c1_32, %c0_33, %c0_34] : memref<4x8x128xf32, #tpu.memory_space<vmem>>, vector<1x8x128xf32>
      %73 = vector.shape_cast %72 : vector<1x8x128xf32> to vector<8x128xf32>
      %74 = vector.shape_cast %71 : vector<8x128xf32> to vector<1x8x128xf32>
      tpu.vector_store %arg5[%c1_32, %c0_33, %c0_34], %74 {strides = array<i32>} : memref<4x8x128xf32, #tpu.memory_space<vmem>>, vector<1x8x128xf32>,
      %c2 = arith.constant 2 : index
      %c0_35 = arith.constant 0 : index
      %c0_36 = arith.constant 0 : index
      %75 = vector.load %arg5[%c2, %c0_35, %c0_36] : memref<4x8x128xf32, #tpu.memory_space<vmem>>, vector<1x8x128xf32>
      %76 = vector.shape_cast %75 : vector<1x8x128xf32> to vector<8x128xf32>
      %77 = vector.shape_cast %57 : vector<16x128xf32> to vector<2x8x128xf32>
      %cst_37 = arith.constant dense<0.000000e+00> : vector<8x128xf32>
      %78 = vector.multi_reduction <add>, %77, %cst_37 [0] : vector<2x8x128xf32> to vector<8x128xf32>
      %79 = arith.addf %76, %78 : vector<8x128xf32>
      %c2_38 = arith.constant 2 : index
      %c0_39 = arith.constant 0 : index
      %c0_40 = arith.constant 0 : index
      %80 = vector.load %arg5[%c2_38, %c0_39, %c0_40] : memref<4x8x128xf32, #tpu.memory_space<vmem>>, vector<1x8x128xf32>
      %81 = vector.shape_cast %80 : vector<1x8x128xf32> to vector<8x128xf32>
      %82 = vector.shape_cast %79 : vector<8x128xf32> to vector<1x8x128xf32>
      tpu.vector_store %arg5[%c2_38, %c0_39, %c0_40], %82 {strides = array<i32>} : memref<4x8x128xf32, #tpu.memory_space<vmem>>, vector<1x8x128xf32>,
      %c3 = arith.constant 3 : index
      %c0_41 = arith.constant 0 : index
      %c0_42 = arith.constant 0 : index
      %83 = vector.load %arg5[%c3, %c0_41, %c0_42] : memref<4x8x128xf32, #tpu.memory_space<vmem>>, vector<1x8x128xf32>
      %84 = vector.shape_cast %83 : vector<1x8x128xf32> to vector<8x128xf32>
      %85 = vector.shape_cast %31 : vector<16x128xf32> to vector<2x8x128xf32>
      %cst_43 = arith.constant dense<0.000000e+00> : vector<8x128xf32>
      %86 = vector.multi_reduction <add>, %85, %cst_43 [0] : vector<2x8x128xf32> to vector<8x128xf32>
      %87 = arith.addf %84, %86 : vector<8x128xf32>
      %c3_44 = arith.constant 3 : index
      %c0_45 = arith.constant 0 : index
      %c0_46 = arith.constant 0 : index
      %88 = vector.load %arg5[%c3_44, %c0_45, %c0_46] : memref<4x8x128xf32, #tpu.memory_space<vmem>>, vector<1x8x128xf32>
      %89 = vector.shape_cast %88 : vector<1x8x128xf32> to vector<8x128xf32>
      %90 = vector.shape_cast %87 : vector<8x128xf32> to vector<1x8x128xf32>
      tpu.vector_store %arg5[%c3_44, %c0_45, %c0_46], %90 {strides = array<i32>} : memref<4x8x128xf32, #tpu.memory_space<vmem>>, vector<1x8x128xf32>,
    } else {
    }
    %c0_i32_5 = arith.constant 0 : i32
    %11 = arith.cmpi eq, %arg1, %c0_i32_5 : i32
    %12 = arith.extui %11 : i1 to i32
    %c0_i32_6 = arith.constant 0 : i32
    %13 = arith.cmpi ne, %12, %c0_i32_6 : i32
    scf.if %13 {
      %c0 = arith.constant 0 : index
      %c0_7 = arith.constant 0 : index
      %c0_8 = arith.constant 0 : index
      %14 = vector.load %arg5[%c0, %c0_7, %c0_8] : memref<4x8x128xf32, #tpu.memory_space<vmem>>, vector<4x8x128xf32>
      %c0_9 = arith.constant 0 : index
      %c0_10 = arith.constant 0 : index
      %c0_11 = arith.constant 0 : index
      %c0_12 = arith.constant 0 : index
      %15 = vector.load %arg4[%c0_9, %c0_10, %c0_11, %c0_12] : memref<1x4x8x128xf32, #tpu.memory_space<vmem>>, vector<1x4x8x128xf32>
      %16 = vector.shape_cast %15 : vector<1x4x8x128xf32> to vector<4x8x128xf32>
      %17 = vector.shape_cast %14 : vector<4x8x128xf32> to vector<1x4x8x128xf32>
      tpu.vector_store %arg4[%c0_9, %c0_10, %c0_11, %c0_12], %17 {strides = array<i32>} : memref<1x4x8x128xf32, #tpu.memory_space<vmem>>, vector<1x4x8x128xf32>,
    } else {
    }
    return
  }
  func.func @transform_0(%arg0: i32, %arg1: i32) -> (i32, i32) {
    %c1_i32 = arith.constant 1 : i32
    %0 = arith.muli %arg0, %c1_i32 : i32
    %1 = arith.addi %0, %arg1 : i32
    %c0_i32 = arith.constant 0 : i32
    %2 = arith.minsi %1, %c0_i32 : i32
    %c0_i32_0 = arith.constant 0 : i32
    %c0_i32_1 = arith.constant 0 : i32
    return %2, %c0_i32_0 : i32, i32
  }
  func.func @transform_1(%arg0: i32, %arg1: i32) -> (i32, i32) {
    %c1_i32 = arith.constant 1 : i32
    %0 = arith.muli %arg0, %c1_i32 : i32
    %1 = arith.addi %0, %arg1 : i32
    %c0_i32 = arith.constant 0 : i32
    %2 = arith.minsi %1, %c0_i32 : i32
    %c0_i32_0 = arith.constant 0 : i32
    %c0_i32_1 = arith.constant 0 : i32
    return %2, %c0_i32_0 : i32, i32
  }
  func.func @transform_2(%arg0: i32, %arg1: i32) -> (i32, i32, i32, i32) {
    %c0_i32 = arith.constant 0 : i32
    %c0_i32_0 = arith.constant 0 : i32
    %c0_i32_1 = arith.constant 0 : i32
    %c0_i32_2 = arith.constant 0 : i32
    return %arg0, %c0_i32, %c0_i32_0, %c0_i32_1 : i32, i32, i32, i32
  }
}

</mosaic_0001>

<bundles_post_ra>
// kernel: tpu_custom_call.1
= control target key start
LH: loop header
LB: loop body
LE: loop exit
PB: predicated region body
PF: predicated region fallthrough
CT: control target
= control target key end

     0   :  { %7 = vsyncpa [#allocation4], 0  ;;  %s1138_s0 = inlined_call_operand.hbm [shape: f32[16,128], index: 0, kind: input, shape index: {}]   ;;  %s1139_s1 = inlined_call_operand.hbm [shape: f32[16,128], index: 1, kind: input, shape index: {}]   ;;  %s1140_s2 = inlined_call_operand.hbm [shape: f32[2,4,8,128], index: 2, kind: output, shape index: {}]  }
   0x1   :  { %9 = vsyncpa [#allocation4 + $0x1], 0 }
   0x2   :  { %10 = vsyncpa [#allocation7], 0 }
   0x3   :  { %12 = vsyncpa [#allocation7 + $0x1], 0 }
   0x4   :  { %13 = vsyncpa [#allocation5], 0 }
   0x5   :  { %15 = vsyncpa [#allocation5 + $0x1], 0  ;;  %s884_s9 = smov 0   ;;  %s886_s10 = smov 0  }
   0x6   :  { %s888_s11 = smov 0   ;;  %s890_s12 = smov 0  }
   0x7   :  { %s892_s13 = smov 0   ;;  %s894_s14 = smov 0  }
   0x8   :  { %s896_s15 = smov 0   ;;  %s898_s16 = smov 0  }
   0x9 LB: > { %s535_s17 = sadd.s32 4294967295, %s859_s16   ;;  %s536_s18 = sadd.s32 4294967294, %s859_s16   ;;  %s859_s16 = sphi %s898_s16, %s21_s16   ;;  %s855_s15 = sphi %s896_s15, %s1159_s15   ;;  %s851_s14 = sphi %s894_s14, %s1158_s14   ;;  %s847_s13 = sphi %s892_s13, %s1128_s13   ;;  %s843_s12 = sphi %s890_s12, %s1157_s12   ;;  %s839_s11 = sphi %s888_s11, %s1156_s11   ;;  %s835_s10 = sphi %s886_s10, %s1155_s10   ;;  %s831_s9 = sphi %s884_s9, %s1154_s9  }
   0xa   : > { %s33_s19 = sadd.s32 1, %s855_s15  ;;  %p828_p1 = scmp.ne.s32.totalorder %s847_s13, 0 }
   0xb   : > { %p35_p0 = scmp.ge.s32.totalorder %s33_s19, 2  ;;  %p54_p2 = scmp.eq.s32.totalorder %s859_s16, 0 }
   0xc   : > { %p59_p3 = scmp.ne.s32.totalorder %s847_s13, %s843_s12  ;;  %p60_p5 = scmp.eq.s32.totalorder %s535_s17, 0 }
   0xd   : > { %s1161_s19 = smov (%p35_p0, %s33_s19), 0  ;;  %p930_p4 = por %p828_p1, %p54_p2 }
   0xe   : > { %p934_p6 = por %p60_p5, %p59_p3  ;;  %s101_s22 = ssub.s32 %s855_s15, %s1161_s19 }
   0xf   : > { %p102_p7 = scmp.eq.s32.totalorder %s101_s22, 0  ;;  %s104_s23 = sadd.s32 1, %s839_s11 }
  0x10   : > { %s1144_s21 = scalar_select %p934_p6, 1, 0 }
  0x11   : > { %s942_s24 = scalar_select %p102_p7, %s839_s11, %s104_s23  }
  0x12   : > { %p114_p8 = scmp.ne.s32.totalorder %s839_s11, %s835_s10  ;;  %p115_p9 = scmp.eq.s32.totalorder %s535_s17, 1 }
  0x13   : > { %p120_p10 = scmp.ne.s32.totalorder %s835_s10, %s831_s9  ;;  %p121_p11 = scmp.eq.s32.totalorder %s536_s18, 1 }
  0x14   : > { %p948_p12 = por %p115_p9, %p114_p8  ;;  %p581_p1 = scmp.lt.s32.totalorder %s859_s16, 2 }
  0x15   : > { %p953_p0 = por %p121_p11, %p120_p10  ;;  %s861_s27 = smov [#allocation3]  }
  0x16   : > { %s1145_s25 = scalar_select %p948_p12, 1, 0 }
  0x17   : > { %s1146_s26 = scalar_select %p953_p0, 1, 0 }
  0x18   : > { %s155_s28 = sshll.u32 %s861_s27, 4  ;;  %p960_p2 = pnand %p581_p1, %p930_p4  ;;  %s156_s28 = int_to_ptr.vmem [resolvable:$true] %s155_s28 }
  0x19   : > { %s692_s4 = scalar_lea.hbm %s1138_s0, 256 }
  0x1a   : > { %p693_p3 = scmp.ne.s32.totalorder %s1138_s0, %s692_s4  ;;  %p694_p5 = pneg %p960_p2 }
  0x1b   : > { %p699_p8 = scmp.lt.u32.totalorder %s692_s4, %s692_s4  ;;  %p701_p9 = scmp.lt.u32.totalorder %s692_s4, %s1138_s0 }
  0x1c   : > { %p695_p7 = pnand %p694_p5, %p693_p3 }
  0x1d   : > { %p702_p10 = por %p701_p9, %p699_p8 }
  0x1e   : > { %p696_p4 = pneg %p695_p7 }
  0x20   : > { %p703_p11 = pnand %p702_p10, %p696_p4 }
  0x22   : > { %706 = shalt.err (!%p703_p11)
}
  0x23   : > { %s707_s12 = scalar_lea.vmem %s156_s28, 256  ;;  %s714_s17 = scalar_lea.vmem %s156_s28, 512 }
  0x24   : > { %p708_p1 = scmp.ne.s32.totalorder %s156_s28, %s707_s12  ;;  %p715_p12 = scmp.lt.s32.totalorder %s156_s28, %s156_s28 }
  0x25   : > { %p716_p6 = scmp.lt.s32.totalorder %s714_s17, %s707_s12 }
  0x26   : > { %p710_p13 = pnand %p708_p1, %p694_p5 }
  0x27   : > { %p717_p3 = por %p716_p6, %p715_p12 }
  0x28   : > { %p711_p0 = pneg %p710_p13 }
  0x2a   : > { %p718_p7 = pnand %p717_p3, %p711_p0 }
  0x2c   : > { %721 = shalt.err (!%p718_p7)
}
  0x2d   : > { %s862_s18 = smov 128   ;;  %s863_s20 = smov 8  }
  0x2e   : > { %573 = dma.hbm_to_vmem [thread:$0]  (!%p960_p2), %s1138_s0, 256, %s156_s28, [#allocation4], %s862_s18, %s862_s18, %s863_s20  }
  0x2f   : > { %p545_p13 = scmp.ge.s32.totalorder %s859_s16, 1  ;;  %p187_p4 = scmp.lt.s32.totalorder %s859_s16, 3 }
  0x30   : > { %s864_s30 = smov [#allocation6]   ;;  %s722_s6 = scalar_lea.hbm %s1139_s1, 256 }
  0x31   : > { %p991_p8 = pnand %p545_p13, %p187_p4  ;;  %s179_s3 = sshll.u32 %s864_s30, 4  ;;  %s180_s3 = int_to_ptr.vmem [resolvable:$true] %s179_s3 }
  0x32   : > { %p723_p6 = scmp.ne.s32.totalorder %s1139_s1, %s722_s6  ;;  %p729_p9 = scmp.lt.u32.totalorder %s722_s6, %s722_s6 }
  0x33   : > { %s1148_s27 = scalar_select %p991_p8, 1, 0 }
  0x34   : > { %p725_p12 = pnand %p723_p6, %p694_p5  ;;  %p731_p10 = scmp.lt.u32.totalorder %s722_s6, %s1139_s1 }
  0x36   : > { %p726_p0 = pneg %p725_p12  ;;  %p732_p11 = por %p731_p10, %p729_p9 }
  0x38   : > { %p733_p1 = pnand %p732_p11, %p726_p0 }
  0x3a   : > { %736 = shalt.err (!%p733_p1)
}
  0x3b   : > { %s737_s17 = scalar_lea.vmem %s180_s3, 256  ;;  %s744_s22 = scalar_lea.vmem %s180_s3, 512 }
  0x3c   : > { %p738_p3 = scmp.ne.s32.totalorder %s180_s3, %s737_s17  ;;  %p745_p4 = scmp.lt.s32.totalorder %s180_s3, %s180_s3 }
  0x3d   : > { %p746_p8 = scmp.lt.s32.totalorder %s744_s22, %s737_s17 }
  0x3e   : > { %p740_p7 = pnand %p738_p3, %p694_p5 }
  0x3f   : > { %p747_p6 = por %p746_p8, %p745_p4 }
  0x40   : > { %p741_p13 = pneg %p740_p7 }
  0x42   : > { %p748_p12 = pnand %p747_p6, %p741_p13 }
  0x44   : > { %751 = shalt.err (!%p748_p12)
}
  0x45   : > { %576 = dma.hbm_to_vmem [thread:$0]  (!%p960_p2), %s1139_s1, 256, %s180_s3, [#allocation7], %s862_s18, %s862_s18, %s863_s20  }
  0x46   : > { %p1149_p0 = scmp.ne.s32.totalorder %s1148_s27, 0 }
  0x47   : > { %s193_s4 = sand.u32 (!%p1149_p0), 1, %s847_s13   ;;  %p1150_p5 = scmp.ne.s32.totalorder (!%p1149_p0), %s1144_s21, 0 }
  0x48   : > { %191 = sbr.rel (%p1149_p0) target bundleno = 236 (0xec), region = 28  ;;  %s546_s5 = sshll.u32 (!%p1149_p0), %s193_s4, 4 }
  0x49   : > { %s194_s6 = scalar_lea.sflag (!%p1149_p0), [#allocation4], %s193_s4  ;;  %s1021_s7 = scalar_lea.vmem (!%p1149_p0), [#allocation3], %s546_s5 }
  0x4f   : > { %817 = dma.done.wait (%p1150_p5), %s194_s6, 256  }
  0x50   : > { %819 = vsyncadd (%p1150_p5), %s194_s6, 4294967040  ;;  %s203_s29 = scalar_lea.sflag [#allocation7], %s193_s4  ;;  %s1027_s8 = scalar_lea.vmem [#allocation6], %s546_s5 }
  0x51   : > { %821 = dma.done.wait (%p1150_p5), %s203_s29, 256  }
  0x52   : > { %823 = vsyncadd (%p1150_p5), %s203_s29, 4294967040  ;;  %s229_s18 = sand.u32 1, %s835_s10   ;;  %v865_v0 = vmov 0.0   ;;  %p549_p2 = scmp.ge.s32.totalorder %s851_s14, 1 }
  0x53   : > { %s548_s20 = sshll.u32 %s229_s18, 5  ;;  %244 = vst [vmem:[#allocation2] sm:$0xff] %v865_v0  ;;  %245 = vst [vmem:[#allocation2 + $0x8] sm:$0xff] %v865_v0  ;;  %v253_v1 = vld [vmem:[%s1021_s7] sm:$0xff] (!%p549_p2)  ;;  %v254_v2 = vld [vmem:[%s1021_s7 + $0x8] sm:$0xff] (!%p549_p2) }
  0x54   : > { %246 = vst [vmem:[#allocation2 + $0x10] sm:$0xff] %v865_v0  ;;  %247 = vst [vmem:[#allocation2 + $0x18] sm:$0xff] %v865_v0  ;;  %s1036_s27 = scalar_lea.vmem [#allocation8], %s548_s20  ;;  %252 = sbr.rel (%p549_p2) target bundleno = 140 (0x8c), region = 44  ;;  %v255_v3 = vld [vmem:[%s1027_s8] sm:$0xff] (!%p549_p2)  ;;  %v256_v4 = vld [vmem:[%s1027_s8 + $0x8] sm:$0xff] (!%p549_p2) }
  0x55   : > { %v550_v5 = vmul.f32 (!%p549_p2), -1.442695, %v253_v1  ;;  %v551_v6 = vmul.f32 (!%p549_p2), -1.442695, %v254_v2  ;;  %v313_v7 = vadd.f32 (!%p549_p2), %v256_v4, %v255_v3  ;;  %v287_v33 = vsub.f32 (!%p549_p2), 1.0, %v255_v3 }
  0x56   : > { %v288_v36 = vsub.f32 (!%p549_p2), 1.0, %v256_v4 }
  0x57   : > { %660 = vpow2.f32 (!%p549_p2), %v550_v5 }
  0x58   : > { %662 = vpow2.f32 (!%p549_p2), %v551_v6 }
  0x5a   : > { %v300_v25 = vld [vmem:[#allocation2 + $0x8] sm:$0xff] (!%p549_p2)  ;;  %v295_v50 = vld [vmem:[#allocation2] sm:$0xff] (!%p549_p2) }
  0x5b   : > { %v312_v8 = vld [vmem:[#allocation2 + $0x18] sm:$0xff]  ;;  %v307_v19 = vld [vmem:[#allocation2 + $0x10] sm:$0xff] }
  0x5c   : > { %v314_v9 = vadd.f32 %v313_v7, %v312_v8 }
  0x5e   : > { %315 = vst [vmem:[#allocation2 + $0x18] sm:$0xff] %v314_v9 }
  0x61   : > { %v661_v10 = vpop.eup %660 }
  0x62   : > { %v663_v11 = vpop.eup %662  ;;  %v263_v12 = vadd.f32 1.0, %v661_v10 }
  0x63   : > { %v264_v13 = vadd.f32 1.0, %v663_v11 }
  0x64   : > { %664 = vrcp.f32 %v263_v12 }
  0x65   : > { %666 = vrcp.f32 %v264_v13 }
  0x6e   : > { %v665_v14 = vpop.eup %664 }
  0x6f   : > { %v667_v15 = vpop.eup %666  ;;  %v269_v16 = vadd.f32 1e-07, %v665_v14  ;;  %v275_v17 = vsub.f32 1.0, %v665_v14  ;;  %v301_v18 = vmul.f32 %v665_v14, %v255_v3 }
  0x70   : > { %v270_v20 = vadd.f32 1e-07, %v667_v15  ;;  %v276_v21 = vsub.f32 1.0, %v667_v15  ;;  %v302_v22 = vmul.f32 %v667_v15, %v256_v4  ;;  %v308_v23 = vadd.f32 %v667_v15, %v665_v14 }
  0x71   : > { %668 = vlog2.f32 %v269_v16  ;;  %v277_v24 = vadd.f32 1e-07, %v275_v17 }
  0x72   : > { %670 = vlog2.f32 %v270_v20  ;;  %v278_v26 = vadd.f32 1e-07, %v276_v21  ;;  %v303_v27 = vadd.f32 %v302_v22, %v301_v18  ;;  %v309_v28 = vadd.f32 %v308_v23, %v307_v19 }
  0x73   : > { %672 = vlog2.f32 %v277_v24 }
  0x74   : > { %674 = vlog2.f32 %v278_v26  ;;  %v304_v29 = vadd.f32 %v303_v27, %v300_v25  ;;  %310 = vst [vmem:[#allocation2 + $0x10] sm:$0xff] %v309_v28 }
  0x76   : > { %305 = vst [vmem:[#allocation2 + $0x8] sm:$0xff] %v304_v29 }
  0x7b   : > { %v669_v30 = vpop.eup %668 }
  0x7c   : > { %v671_v31 = vpop.eup %670  ;;  %v272_v32 = vmul.f32 0.6931472, %v669_v30 }
  0x7d   : > { %v673_v34 = vpop.eup %672  ;;  %v274_v35 = vmul.f32 0.6931472, %v671_v31 }
  0x7e   : > { %v675_v37 = vpop.eup %674  ;;  %v280_v38 = vmul.f32 0.6931472, %v673_v34  ;;  %v283_v39 = vmul.f32 %v272_v32, %v255_v3 }
  0x7f   : > { %v282_v40 = vmul.f32 0.6931472, %v675_v37  ;;  %v284_v41 = vmul.f32 %v274_v35, %v256_v4 }
  0x80   : > { %v285_v42 = vmul.f32 0.5, %v283_v39  ;;  %v289_v43 = vmul.f32 %v287_v33, %v280_v38 }
  0x81   : > { %v286_v44 = vmul.f32 0.5, %v284_v41  ;;  %v290_v45 = vmul.f32 %v288_v36, %v282_v40 }
  0x82   : > { %v291_v46 = vmul.f32 0.5, %v289_v43 }
  0x83   : > { %v292_v47 = vmul.f32 0.5, %v290_v45 }
  0x84   : > { %v293_v48 = vadd.f32 %v291_v46, %v285_v42 }
  0x85   : > { %v294_v49 = vadd.f32 %v292_v47, %v286_v44 }
  0x87   : > { %v296_v51 = vadd.f32 %v294_v49, %v293_v48 }
  0x89   : > { %v297_v52 = vadd.f32 %v296_v51, %v295_v50 }
  0x8b   : > { %298 = vst [vmem:[#allocation2] sm:$0xff] %v297_v52 }
  0x8c PF: > { %p552_p8 = scmp.lt.s32.totalorder %s851_s14, 1 }
  0x8d   : > { %s553_s21 = sshll.u32 (!%p552_p8), %s851_s14, 11  ;;  %v325_v53 = vlaneseq (!%p552_p8)  ;;  %v320_v61 = vld [vmem:[%s1021_s7] sm:$0xff] (!%p552_p8)  ;;  %v321_v0 = vld [vmem:[%s1021_s7 + $0x8] sm:$0xff] (!%p552_p8) }
  0x8e   : > { %319 = sbr.rel (%p552_p8) target bundleno = 210 (0xd2), region = 48  ;;  %v332_v55 = vstv (!%p552_p8), %s553_s21  ;;  %v322_v1 = vld [vmem:[%s1027_s8] sm:$0xff] (!%p552_p8)  ;;  %v323_v2 = vld [vmem:[%s1027_s8 + $0x8] sm:$0xff] (!%p552_p8) }
  0x8f   : > { %v326_v54 = vshrl.u32 (!%p552_p8), %v325_v53, 7  ;;  %v329_v57 = vand.u32 (!%p552_p8), 127, %v325_v53  ;;  %v402_v9 = vld [vmem:[#allocation2 + $0x18] sm:$0xff] (!%p552_p8)  ;;  %v397_v27 = vld [vmem:[#allocation2 + $0x10] sm:$0xff] (!%p552_p8)  ;;  %v390_v31 = vld [vmem:[#allocation2 + $0x8] sm:$0xff] (!%p552_p8) }
  0x91   : > { %v327_v56 = vadd.s32 (!%p552_p8), 8, %v326_v54  ;;  %v330_v58 = vmul.u32 (!%p552_p8), 128, %v326_v54 }
  0x93   : > { %v331_v59 = vmul.u32 (!%p552_p8), 128, %v327_v56  ;;  %v333_v60 = vadd.s32 (!%p552_p8), %v332_v55, %v330_v58 }
  0x95   : > { %v334_v62 = vadd.s32 %v332_v55, %v331_v59  ;;  %v1046_v63 = vadd.s32 %v333_v60, %v329_v57 }
  0x97   : > { %v1051_v3 = vadd.s32 %v334_v62, %v329_v57  ;;  %vm337_vm0 = vcmp.lt.s32.totalorder %v1046_v63, 2048  ;;  %v385_v57 = vld [vmem:[#allocation2] sm:$0xff] }
  0x98   : > { %v339_v4 = vsel %vm337_vm0, %v320_v61, 0.0  ;;  %v341_v7 = vsel %vm337_vm0, %v322_v1, 0.0 }
  0x99   : > { %vm338_vm1 = vcmp.lt.s32.totalorder %v1051_v3, 2048  ;;  %v554_v5 = vmul.f32 -1.442695, %v339_v4  ;;  %v373_v38 = vsub.f32 1.0, %v341_v7 }
  0x9a   : > { %v340_v6 = vsel %vm338_vm1, %v321_v0, 0.0  ;;  %v342_v8 = vsel %vm338_vm1, %v323_v2, 0.0 }
  0x9b   : > { %676 = vpow2.f32 %v554_v5  ;;  %v555_v10 = vmul.f32 -1.442695, %v340_v6  ;;  %v403_v11 = vadd.f32 %v342_v8, %v341_v7  ;;  %v374_v42 = vsub.f32 1.0, %v342_v8 }
  0x9d   : > { %678 = vpow2.f32 %v555_v10  ;;  %v404_v12 = vadd.f32 %v403_v11, %v402_v9 }
  0x9f   : > { %405 = vst [vmem:[#allocation2 + $0x18] sm:$0xff] %v404_v12 }
  0xa5   : > { %v677_v13 = vpop.eup %676 }
  0xa6   : > { %v349_v14 = vadd.f32 1.0, %v677_v13 }
  0xa7   : > { %v679_v15 = vpop.eup %678 }
  0xa8   : > { %v350_v16 = vadd.f32 1.0, %v679_v15  ;;  %680 = vrcp.f32 %v349_v14 }
  0xaa   : > { %682 = vrcp.f32 %v350_v16 }
  0xb2   : > { %v681_v17 = vpop.eup %680 }
  0xb3   : > { %v355_v18 = vadd.f32 1e-07, %v681_v17  ;;  %v361_v19 = vsub.f32 1.0, %v681_v17  ;;  %v383_v20 = vsel %vm337_vm0, %v681_v17, 0.0 }
  0xb4   : > { %v683_v21 = vpop.eup %682  ;;  %v391_v22 = vmul.f32 %v383_v20, %v341_v7 }
  0xb5   : > { %v356_v23 = vadd.f32 1e-07, %v683_v21  ;;  %684 = vlog2.f32 %v355_v18  ;;  %v362_v24 = vsub.f32 1.0, %v683_v21  ;;  %v363_v25 = vadd.f32 1e-07, %v361_v19 }
  0xb6   : > { %v384_v26 = vsel %vm338_vm1, %v683_v21, 0.0 }
  0xb7   : > { %686 = vlog2.f32 %v356_v23  ;;  %v364_v28 = vadd.f32 1e-07, %v362_v24  ;;  %v392_v29 = vmul.f32 %v384_v26, %v342_v8  ;;  %v398_v30 = vadd.f32 %v384_v26, %v383_v20 }
  0xb8   : > { %688 = vlog2.f32 %v363_v25 }
  0xb9   : > { %690 = vlog2.f32 %v364_v28  ;;  %v393_v32 = vadd.f32 %v392_v29, %v391_v22  ;;  %v399_v33 = vadd.f32 %v398_v30, %v397_v27 }
  0xbb   : > { %v394_v34 = vadd.f32 %v393_v32, %v390_v31  ;;  %400 = vst [vmem:[#allocation2 + $0x10] sm:$0xff] %v399_v33 }
  0xbd   : > { %395 = vst [vmem:[#allocation2 + $0x8] sm:$0xff] %v394_v34 }
  0xbf   : > { %v685_v35 = vpop.eup %684 }
  0xc0   : > { %v358_v36 = vmul.f32 0.6931472, %v685_v35 }
  0xc1   : > { %v687_v37 = vpop.eup %686 }
  0xc2   : > { %v689_v39 = vpop.eup %688  ;;  %v360_v40 = vmul.f32 0.6931472, %v687_v37  ;;  %v369_v41 = vmul.f32 %v358_v36, %v341_v7 }
  0xc3   : > { %v691_v43 = vpop.eup %690  ;;  %v366_v44 = vmul.f32 0.6931472, %v689_v39 }
  0xc4   : > { %v368_v45 = vmul.f32 0.6931472, %v691_v43  ;;  %v370_v46 = vmul.f32 %v360_v40, %v342_v8  ;;  %v371_v47 = vmul.f32 0.5, %v369_v41 }
  0xc5   : > { %v375_v48 = vmul.f32 %v373_v38, %v366_v44 }
  0xc6   : > { %v372_v49 = vmul.f32 0.5, %v370_v46  ;;  %v376_v50 = vmul.f32 %v374_v42, %v368_v45 }
  0xc7   : > { %v377_v51 = vmul.f32 0.5, %v375_v48 }
  0xc8   : > { %v378_v52 = vmul.f32 0.5, %v376_v50 }
  0xc9   : > { %v379_v53 = vadd.f32 %v377_v51, %v371_v47 }
  0xca   : > { %v380_v54 = vadd.f32 %v378_v52, %v372_v49 }
  0xcb   : > { %v381_v55 = vsel %vm337_vm0, %v379_v53, 0.0 }
  0xcc   : > { %v382_v56 = vsel %vm338_vm1, %v380_v54, 0.0 }
  0xcd   : > { %v386_v58 = vadd.f32 %v382_v56, %v381_v55 }
  0xcf   : > { %v387_v59 = vadd.f32 %v386_v58, %v385_v57 }
  0xd1   : > { %388 = vst [vmem:[#allocation2] sm:$0xff] %v387_v59 }
  0xd2 PF: > { %v410_v61 = vld [vmem:[#allocation2 + $0x8] sm:$0xff]  ;;  %v411_v62 = vld [vmem:[#allocation2 + $0x10] sm:$0xff]  ;;  %s563_s3 = sshll.u32 %s851_s14, 9  ;;  %v412_v63 = vld [vmem:[#allocation2 + $0x18] sm:$0xff]  ;;  %s431_s22 = sshll.u32 %s1036_s27, 4  ;;  %s1082_s22 = int_to_ptr.vmem [resolvable:$true] %s431_s22 }
  0xd3   : > { %414 = vst [vmem:[%s1036_s27 + $0x8] sm:$0xff] %v410_v61  ;;  %415 = vst [vmem:[%s1036_s27 + $0x10] sm:$0xff] %v411_v62  ;;  %s1078_s17 = scalar_lea.hbm %s1140_s2, %s563_s3  ;;  %s1086_s23 = scalar_lea.sflag [#allocation5], %s229_s18 }
  0xd4   : > { %416 = vst [vmem:[%s1036_s27 + $0x18] sm:$0xff] %v412_v63  ;;  %s752_s14 = scalar_lea.vmem %s1082_s22, 512  ;;  %p1151_p10 = scmp.ne.s32.totalorder %s1145_s25, 0 }
  0xd5   : > { %p753_p9 = scmp.ne.s32.totalorder %s1082_s22, %s752_s14  ;;  %s866_s30 = smov [#allocation8]  }
  0xd6   : > { %s756_s4 = sshll.u32 %s866_s30, 4  ;;  %s757_s4 = int_to_ptr.vmem [resolvable:$false] %s756_s4 }
  0xd7   : > { %p754_p11 = pnand %p753_p9, %p1151_p10  ;;  %s758_s5 = scalar_lea.vmem %s757_s4, 1024 }
  0xd8   : > { %v409_v60 = vld [vmem:[#allocation2] sm:$0xff]  ;;  %p759_p3 = scmp.lt.s32.totalorder %s1082_s22, %s757_s4  ;;  %p760_p7 = scmp.lt.s32.totalorder %s758_s5, %s752_s14 }
  0xd9   : > { %413 = vst [vmem:[%s1036_s27] sm:$0xff] %v409_v60  ;;  %p755_p1 = pneg %p754_p11 }
  0xda   : > { %p761_p13 = por %p760_p7, %p759_p3 }
  0xdc   : > { %p762_p4 = pnand %p761_p13, %p755_p1 }
  0xde   : > { %765 = shalt.err (!%p762_p4)
}
  0xdf   : > { %s766_s6 = scalar_lea.hbm %s1078_s17, 512  ;;  %s770_s8 = scalar_lea.hbm %s1140_s2, 1024 }
  0xe0   : > { %p767_p6 = scmp.ne.s32.totalorder %s1078_s17, %s766_s6  ;;  %p771_p5 = scmp.lt.u32.totalorder %s1078_s17, %s1140_s2 }
  0xe1   : > { %p772_p2 = scmp.lt.u32.totalorder %s770_s8, %s766_s6  ;;  %p774_p9 = scmp.lt.u32.totalorder %s766_s6, %s1078_s17 }
  0xe2   : > { %p768_p12 = pnand %p767_p6, %p1151_p10 }
  0xe3   : > { %p773_p8 = por %p772_p2, %p771_p5 }
  0xe4   : > { %p769_p0 = pneg %p768_p12 }
  0xe5   : > { %p775_p11 = por %p774_p9, %p773_p8 }
  0xe7   : > { %p776_p1 = pnand %p775_p11, %p769_p0 }
  0xe9   : > { %779 = shalt.err (!%p776_p1)
}
  0xea   : > { %s867_s27 = smov 128   ;;  %s868_s21 = smov 8  }
  0xeb   : > { %568 = dma.vmem_to_hbm [thread:$0]  (%p1151_p10), %s1082_s22, 512, %s1078_s17, %s1086_s23, %s867_s27, %s867_s27, %s868_s21  }
  0xec PF: > { %s446_s3 = sand.u32 1, %s831_s9   ;;  %p1152_p3 = scmp.ne.s32.totalorder %s1146_s26, 0 }
  0xed   : > { %p1153_p7 = scmp.ge.s32.totalorder %s859_s16, 2  ;;  %s447_s28 = scalar_lea.sflag [#allocation5], %s446_s3 }
  0xef   : > { %p578_p13 = pnand %p1153_p7, %p1152_p3 }
  0xf1   : > { %825 = dma.done.wait (!%p578_p13), %s447_s28, 512  }
  0xf2   : > { %827 = vsyncadd (!%p578_p13), %s447_s28, 4294966784  ;;  %s21_s16 = sadd.s32 1, %s859_s16   ;;  %s1154_s9 = smov %s835_s10 }
  0xf3   : > { %p18_p4 = scmp.ge.s32.totalorder %s21_s16, 4   ;;  %s1155_s10 = smov %s839_s11 }
  0xf4   : > { %s1156_s11 = smov %s942_s24  ;;  %s1157_s12 = smov %s847_s13 }
  0xf5   : > { %s1128_s13 = smov 0   ;;  %s1158_s14 = smov %s855_s15 }
  0xf6   : > { %s1159_s15 = smov %s1161_s19  ;;  %20 = sbr.rel (!%p18_p4) target bundleno = 9 (0x9), region = 108 }
  0xfd   :  { %452 = vsyncpa [#allocation4], 1 }
  0xfe   :  { %454 = vsyncpa [#allocation4 + $0x1], 1 }
  0xff   :  { %455 = vsyncpa [#allocation7], 1 }
 0x100   :  { %457 = vsyncpa [#allocation7 + $0x1], 1 }
 0x101   :  { %458 = vsyncpa [#allocation5], 1 }
 0x102   :  { %460 = vsyncpa [#allocation5 + $0x1], 1 }

</bundles_post_ra>
